<compile_context>
chip_gen: v7x
topology: tpu7x:2x2x1
jax: 0.10.0
libtpu: 0.0.40
codegen_flags: <defaults>
</compile_context>

<pallas_src>
import functools

import jax
import jax.numpy as jnp
from jax.experimental import pallas as pl
from jax.experimental.pallas import tpu as pltpu

_EPS = 1e-5
_LANE = 128
_SUBLANE = 8
# Conservative per-call tile budget: safe on v7x (64 MiB physical / 32 MiB default
# scoped VMEM) while leaving headroom for double-buffering and f32 temporaries.
_VMEM_TILE_BUDGET = 24 * 1024 * 1024
_VMEM_LIMIT_BYTES = 48 * 1024 * 1024


# --------------------------------------------------------------------------------------
# Kernels
# --------------------------------------------------------------------------------------
def _bn1d_fused_kernel(x_ref, gamma_ref, beta_ref, o_ref, *, eps):
    """Single-pass BN over one (N, TILE_C) block: reduce over N, then y = x*scale+shift."""
    x = x_ref[...].astype(jnp.float32)
    inv_n = jnp.float32(1.0 / x.shape[0])
    s = jnp.sum(x, axis=0, keepdims=True)            # (1, TILE_C)
    sq = jnp.sum(x * x, axis=0, keepdims=True)       # (1, TILE_C)
    mean = s * inv_n
    var = jnp.maximum(sq * inv_n - mean * mean, 0.0)  # biased var, clamped (cancellation)
    scale = jax.lax.rsqrt(var + eps) * gamma_ref[...]
    shift = beta_ref[...] - mean * scale
    o_ref[...] = (x * scale + shift).astype(o_ref.dtype)


def _bn1d_stats_kernel(x_ref, sum_ref, sumsq_ref):
    """Pass 1 (large N): accumulate per-channel sum and sum-of-squares over the N grid axis."""
    @pl.when(pl.program_id(1) == 0)
    def _():
        sum_ref[...] = jnp.zeros_like(sum_ref)
        sumsq_ref[...] = jnp.zeros_like(sumsq_ref)

    x = x_ref[...].astype(jnp.float32)
    sum_ref[...] += jnp.sum(x, axis=0, keepdims=True)
    sumsq_ref[...] += jnp.sum(x * x, axis=0, keepdims=True)


def _bn1d_apply_kernel(x_ref, sum_ref, sumsq_ref, gamma_ref, beta_ref, o_ref, *,
                       eps, n_total):
    """Pass 2 (large N): y = x * scale + shift using the accumulated per-channel stats."""
    x = x_ref[...].astype(jnp.float32)
    inv_n = jnp.float32(1.0 / n_total)
    mean = sum_ref[...] * inv_n
    var = jnp.maximum(sumsq_ref[...] * inv_n - mean * mean, 0.0)
    scale = jax.lax.rsqrt(var + eps) * gamma_ref[...]
    shift = beta_ref[...] - mean * scale
    o_ref[...] = (x * scale + shift).astype(o_ref.dtype)


# --------------------------------------------------------------------------------------
# Tiling heuristics
# --------------------------------------------------------------------------------------
def _choose_tile_c(c):
    """Largest lane-dense (multiple-of-128) tile dividing C; full C for small/odd C."""
    if c % _LANE != 0:
        return c  # block equal to the full dim is always legal (lane-masked stores)
    for t in (1024, 512, 256, 128):
        if c % t == 0:
            return t
    return _LANE


def _choose_tile_n(n, tile_c, in_itemsize, out_itemsize):
    """Largest multiple-of-8 row tile dividing N that fits the VMEM budget (or None)."""
    per_row = tile_c * (2 * in_itemsize + 2 * out_itemsize + 3 * 4)
    for t in (4096, 2048, 1024, 512, 256, 128, 64, 32, 16, 8):
        if t <= n and n % t == 0 and t * per_row <= _VMEM_TILE_BUDGET:
            return t
    return None


# --------------------------------------------------------------------------------------
# Wrapper
# --------------------------------------------------------------------------------------
def batch_norm_1d(x, gamma, beta, *, eps=_EPS, force_two_pass=False):
    """BatchNorm1d training-mode forward on an (N, C) input via Pallas TPU kernels."""
    n, c = x.shape
    gamma2d = gamma.reshape(1, c).astype(jnp.float32)
    beta2d = beta.reshape(1, c).astype(jnp.float32)

    tile_c = _choose_tile_c(c)
    num_c = c // tile_c
    in_sz = x.dtype.itemsize
    out_sz = x.dtype.itemsize

    # Single-pass estimate: double-buffered input + output tiles plus f32 temporaries.
    single_pass_bytes = n * tile_c * (2 * in_sz + 2 * out_sz + 3 * 4)
    use_single = (single_pass_bytes <= _VMEM_TILE_BUDGET) and not force_two_pass

    if use_single:
        kernel = functools.partial(_bn1d_fused_kernel, eps=eps)
        return pl.pallas_call(
            kernel,
            out_shape=jax.ShapeDtypeStruct((n, c), x.dtype),
            grid=(num_c,),
            in_specs=[
                pl.BlockSpec((n, tile_c), lambda j: (0, j)),
                pl.BlockSpec((1, tile_c), lambda j: (0, j)),
                pl.BlockSpec((1, tile_c), lambda j: (0, j)),
            ],
            out_specs=pl.BlockSpec((n, tile_c), lambda j: (0, j)),
            compiler_params=pltpu.CompilerParams(
                dimension_semantics=("parallel",),
                vmem_limit_bytes=_VMEM_LIMIT_BYTES),
        )(x, gamma2d, beta2d)

    # ---------------- Two-pass path for N too large for a full-N block ----------------
    tile_n = _choose_tile_n(n, tile_c, in_sz, out_sz)
    if tile_n is None:
        # TODO(synk): N has no multiple-of-8 divisor that fits the budget; fall back to a
        # full-N block (may exceed scoped VMEM for extreme/prime N; needs masked tiling).
        tile_n = n
    num_n = n // tile_n

    # Pass 1: per-channel sum / sum-of-squares, accumulated across the (arbitrary) N axis.
    sums, sumsqs = pl.pallas_call(
        _bn1d_stats_kernel,
        out_shape=(jax.ShapeDtypeStruct((1, c), jnp.float32),
                   jax.ShapeDtypeStruct((1, c), jnp.float32)),
        grid=(num_c, num_n),
        in_specs=[pl.BlockSpec((tile_n, tile_c), lambda j, i: (i, j))],
        out_specs=(pl.BlockSpec((1, tile_c), lambda j, i: (0, j)),
                   pl.BlockSpec((1, tile_c), lambda j, i: (0, j))),
        compiler_params=pltpu.CompilerParams(
            dimension_semantics=("parallel", "arbitrary"),
            vmem_limit_bytes=_VMEM_LIMIT_BYTES),
    )(x)

    # Pass 2: elementwise normalize + affine; both grid axes fully independent.
    apply_kernel = functools.partial(_bn1d_apply_kernel, eps=eps, n_total=float(n))
    return pl.pallas_call(
        apply_kernel,
        out_shape=jax.ShapeDtypeStruct((n, c), x.dtype),
        grid=(num_c, num_n),
        in_specs=[
            pl.BlockSpec((tile_n, tile_c), lambda j, i: (i, j)),
            pl.BlockSpec((1, tile_c), lambda j, i: (0, j)),
            pl.BlockSpec((1, tile_c), lambda j, i: (0, j)),
            pl.BlockSpec((1, tile_c), lambda j, i: (0, j)),
            pl.BlockSpec((1, tile_c), lambda j, i: (0, j)),
        ],
        out_specs=pl.BlockSpec((tile_n, tile_c), lambda j, i: (i, j)),
        compiler_params=pltpu.CompilerParams(
            dimension_semantics=("parallel", "parallel"),
            vmem_limit_bytes=_VMEM_LIMIT_BYTES),
    )(x, sums, sumsqs, gamma2d, beta2d)


class SwitchableBatchNorm1d:
    """JAX/Pallas port of the PyTorch SwitchableBatchNorm1d module (forward only)."""

    def __init__(self, num_features_list):
        self.num_features_list = list(num_features_list)
        # PyTorch nn.BatchNorm1d default init: weight (gamma) = 1, bias (beta) = 0.
        self.params = [
            (jnp.ones((f,), jnp.float32), jnp.zeros((f,), jnp.float32))
            for f in self.num_features_list
        ]
        # TODO(synk): running_mean/running_var momentum updates (training-time buffer side
        # effects of nn.BatchNorm1d) are not modeled; only the forward math is implemented.
        # TODO(synk): for the tiny C values in num_features_list (16/32/64), packing several
        # BN instances / channel groups into one lane-dense (…,128k) slab in the wrapper
        # would remove masked stores; not done here to keep the per-instance interface.

    def __call__(self, x, idx):
        gamma, beta = self.params[idx]
        assert x.shape[1] == self.num_features_list[idx]
        return batch_norm_1d(x, gamma, beta)


# --------------------------------------------------------------------------------------
# Reference + self-test
# --------------------------------------------------------------------------------------
def _reference_bn(x, gamma, beta, eps=_EPS):
    mean = jnp.mean(x, axis=0, keepdims=True)
    var = jnp.mean((x - mean) ** 2, axis=0, keepdims=True)
    return (x - mean) / jnp.sqrt(var + eps) * gamma.reshape(1, -1) + beta.reshape(1, -1)


if __name__ == "__main__":
    # --- Test 1: module forward at the shipped feature sizes (small C, full-dim block) ---
    key = jax.random.PRNGKey(0)
    num_features_list = [16, 32, 64]
    idx = 1  # the 32-feature BatchNorm1d
    n, c = 8, num_features_list[idx]
    x = jax.random.normal(key, (n, c), dtype=jnp.float32) * 3.0 + 1.5

    module = SwitchableBatchNorm1d(num_features_list)
    y = jax.block_until_ready(module(x, idx))
    ref = _reference_bn(x, jnp.ones((c,), jnp.float32), jnp.zeros((c,), jnp.float32))
    assert jnp.allclose(y, ref, atol=1e-4, rtol=1e-4), "mismatch vs reference (module)"

    # --- Test 2: lane-dense tiled single-pass path (C multiple of 128, grid of 3 tiles) ---
    k1, k2, k3 = jax.random.split(jax.random.PRNGKey(1), 3)
    n2, c2 = 48, 384
    x2 = jax.random.normal(k1, (n2, c2), dtype=jnp.float32) * 2.0 - 0.5
    g2 = 1.0 + 0.1 * jax.random.normal(k2, (c2,), dtype=jnp.float32)
    b2 = 0.1 * jax.random.normal(k3, (c2,), dtype=jnp.float32)
    y2 = jax.block_until_ready(batch_norm_1d(x2, g2, b2))
    ref2 = _reference_bn(x2, g2, b2)
    assert jnp.allclose(y2, ref2, atol=1e-4, rtol=1e-4), "mismatch vs reference (tiled)"

    # --- Test 3: force the large-N two-pass structure on the same data ---
    y3 = jax.block_until_ready(batch_norm_1d(x2, g2, b2, force_two_pass=True))
    assert jnp.allclose(y3, ref2, atol=1e-4, rtol=1e-4), "mismatch vs reference (two-pass)"

    print("KERNEL_OK")
</pallas_src>

<mosaic_0001>
module attributes {stable_mosaic.version = 11 : i64} {
  func.func @_bn1d_fused_kernel(%arg0: i32, %arg1: memref<8x32xf32, #tpu.memory_space<vmem>>, %arg2: memref<1x32xf32, #tpu.memory_space<vmem>>, %arg3: memref<1x32xf32, #tpu.memory_space<vmem>>, %arg4: memref<8x32xf32, #tpu.memory_space<vmem>>) attributes {dimension_semantics = [#tpu.dimension_semantics<parallel>], iteration_bounds = array<i64: 1>, scalar_prefetch = 0 : i64, scratch_operands = 0 : i64, tpu.core_type = #tpu.core_type<tc>, window_params = [{transform_indices = @transform_0, window_bounds = array<i64: 8, 32>}, {transform_indices = @transform_1, window_bounds = array<i64: 1, 32>}, {transform_indices = @transform_2, window_bounds = array<i64: 1, 32>}, {transform_indices = @transform_3, window_bounds = array<i64: 8, 32>}]} {
    %c0 = arith.constant 0 : index
    %c0_0 = arith.constant 0 : index
    %0 = vector.load %arg1[%c0, %c0_0] : memref<8x32xf32, #tpu.memory_space<vmem>>, vector<8x32xf32>
    %cst = arith.constant dense<0.000000e+00> : vector<32xf32>
    %1 = vector.multi_reduction <add>, %0, %cst [0] : vector<8x32xf32> to vector<32xf32>
    %2 = vector.shape_cast %1 : vector<32xf32> to vector<1x32xf32>
    %3 = arith.mulf %0, %0 : vector<8x32xf32>
    %cst_1 = arith.constant dense<0.000000e+00> : vector<32xf32>
    %4 = vector.multi_reduction <add>, %3, %cst_1 [0] : vector<8x32xf32> to vector<32xf32>
    %5 = vector.shape_cast %4 : vector<32xf32> to vector<1x32xf32>
    %cst_2 = arith.constant 1.250000e-01 : f32
    %6 = vector.broadcast %cst_2 : f32 to vector<1x32xf32>
    %7 = arith.mulf %2, %6 : vector<1x32xf32>
    %cst_3 = arith.constant 1.250000e-01 : f32
    %8 = vector.broadcast %cst_3 : f32 to vector<1x32xf32>
    %9 = arith.mulf %5, %8 : vector<1x32xf32>
    %10 = arith.mulf %7, %7 : vector<1x32xf32>
    %11 = arith.subf %9, %10 : vector<1x32xf32>
    %cst_4 = arith.constant 0.000000e+00 : f32
    %12 = vector.broadcast %cst_4 : f32 to vector<1x32xf32>
    %13 = arith.maximumf %11, %12 : vector<1x32xf32>
    %cst_5 = arith.constant 9.99999974E-6 : f32
    %14 = vector.broadcast %cst_5 : f32 to vector<1x32xf32>
    %15 = arith.addf %13, %14 : vector<1x32xf32>
    %16 = math.rsqrt %15 : vector<1x32xf32>
    %c0_6 = arith.constant 0 : index
    %c0_7 = arith.constant 0 : index
    %17 = vector.load %arg2[%c0_6, %c0_7] : memref<1x32xf32, #tpu.memory_space<vmem>>, vector<1x32xf32>
    %18 = arith.mulf %16, %17 : vector<1x32xf32>
    %c0_8 = arith.constant 0 : index
    %c0_9 = arith.constant 0 : index
    %19 = vector.load %arg3[%c0_8, %c0_9] : memref<1x32xf32, #tpu.memory_space<vmem>>, vector<1x32xf32>
    %20 = arith.mulf %7, %18 : vector<1x32xf32>
    %21 = arith.subf %19, %20 : vector<1x32xf32>
    %22 = vector.broadcast %18 : vector<1x32xf32> to vector<8x32xf32>
    %23 = arith.mulf %0, %22 : vector<8x32xf32>
    %24 = vector.broadcast %21 : vector<1x32xf32> to vector<8x32xf32>
    %25 = arith.addf %23, %24 : vector<8x32xf32>
    %c0_10 = arith.constant 0 : index
    %c0_11 = arith.constant 0 : index
    %26 = vector.load %arg4[%c0_10, %c0_11] : memref<8x32xf32, #tpu.memory_space<vmem>>, vector<8x32xf32>
    tpu.vector_store %arg4[%c0_10, %c0_11], %25 {strides = array<i32>} : memref<8x32xf32, #tpu.memory_space<vmem>>, vector<8x32xf32>,
    return
  }
  func.func @transform_0(%arg0: i32) -> (i32, i32) {
    %c0_i32 = arith.constant 0 : i32
    %c0_i32_0 = arith.constant 0 : i32
    return %c0_i32, %arg0 : i32, i32
  }
  func.func @transform_1(%arg0: i32) -> (i32, i32) {
    %c0_i32 = arith.constant 0 : i32
    %c0_i32_0 = arith.constant 0 : i32
    return %c0_i32, %arg0 : i32, i32
  }
  func.func @transform_2(%arg0: i32) -> (i32, i32) {
    %c0_i32 = arith.constant 0 : i32
    %c0_i32_0 = arith.constant 0 : i32
    return %c0_i32, %arg0 : i32, i32
  }
  func.func @transform_3(%arg0: i32) -> (i32, i32) {
    %c0_i32 = arith.constant 0 : i32
    %c0_i32_0 = arith.constant 0 : i32
    return %c0_i32, %arg0 : i32, i32
  }
}

</mosaic_0001>

<bundles_post_ra>
// kernel: tpu_custom_call.1
= control target key start
LH: loop header
LB: loop body
LE: loop exit
PB: predicated region body
PF: predicated region fallthrough
CT: control target
= control target key end

     0   :  { %8 = vsyncpa [#allocation3], 0  ;;  %s191_s0 = inlined_call_operand.hbm [shape: f32[8,32], index: 0, kind: input, shape index: {}]   ;;  %s192_s1 = inlined_call_operand.vmem [shape: f32[1,32], index: 1, kind: input, shape index: {}]   ;;  %s193_s2 = inlined_call_operand.vmem [shape: f32[1,32], index: 2, kind: input, shape index: {}]   ;;  %s194_s3 = inlined_call_operand.hbm [shape: f32[8,32], index: 3, kind: output, shape index: {}]  }
   0x1   :  { %9 = vsyncpa [#allocation4], 0  ;;  %s136_s12 = smov [#allocation2]   ;;  %s88_s16 = scalar_lea.hbm %s191_s0, 128 }
   0x2   :  { %s16_s13 = sshll.u32 %s136_s12, 4  ;;  %p89_p0 = scmp.ne.s32.totalorder %s191_s0, %s88_s16  ;;  %s17_s13 = int_to_ptr.vmem [resolvable:$true] %s16_s13 }
   0x3   :  { %p92_p1 = scmp.lt.u32.totalorder %s88_s16, %s191_s0 }
   0x5   :  { %p94_p2 = pnand %p92_p1, %p89_p0 }
   0x7   :  { %97 = shalt.err (!%p94_p2)
}
   0x8   :  { %s98_s21 = scalar_lea.vmem %s17_s13, 128  ;;  %p103_p4 = scmp.lt.s32.totalorder %s17_s13, %s17_s13 }
   0x9   :  { %p99_p3 = scmp.ne.s32.totalorder %s17_s13, %s98_s21  ;;  %p104_p5 = scmp.lt.s32.totalorder %s98_s21, %s98_s21 }
   0xb   :  { %p105_p6 = por %p104_p5, %p103_p4 }
   0xd   :  { %p106_p7 = pnand %p105_p6, %p99_p3 }
   0xf   :  { %109 = shalt.err (!%p106_p7)
}
  0x10   :  { %19 = dma.hbm_to_vmem [thread:$0]  %s191_s0, 128, %s17_s13, [#allocation3]  }
  0x11   :  { %132 = dma.done.wait [#allocation3], 128  }
  0x12   :  { %133 = vsyncadd [#allocation3], 4294967168  ;;  %vm28_vm0 = vcmask 261120   ;;  %v27_v0 = vld [vmem:[#allocation2] sm:$0xff]  ;;  %v56_v22 = vlaneseq  ;;  %s137_s27 = smov [#allocation5]  }
  0x13   :  { %v29_v1 = vsel %vm28_vm0, %v27_v0, 0.0  ;;  %v36_v2 = vmul.f32 %v27_v0, %v27_v0  ;;  %v51_v24 = vld [vmem:[%s192_s1] sm:$0x1]  ;;  %s75_s28 = sshll.u32 %s137_s27, 4  ;;  %s76_s28 = int_to_ptr.vmem [resolvable:$true] %s75_s28 }
  0x14   :  { %v30_v3 = vrot.slane %v29_v1, 4  ;;  %v57_v23 = vshrl.u32 %v56_v22, 7  ;;  %v53_v28 = vld [vmem:[%s193_s2] sm:$0x1]  ;;  %s110_s29 = scalar_lea.vmem %s76_s28, 128  ;;  %p115_p9 = scmp.lt.s32.totalorder %s76_s28, %s76_s28 }
  0x15   :  { %v37_v4 = vsel %vm28_vm0, %v36_v2, 0.0  ;;  %p111_p8 = scmp.ne.s32.totalorder %s76_s28, %s110_s29  ;;  %p116_p10 = scmp.lt.s32.totalorder %s110_s29, %s110_s29 }
  0x16   :  { %v31_v5 = vadd.f32 %v30_v3, %v29_v1  ;;  %v38_v6 = vrot.slane %v37_v4, 4  ;;  %v58_v25 = vsub.s32 0, %v57_v23 }
  0x17   :  { %p117_p11 = por %p116_p10, %p115_p9 }
  0x18   :  { %v32_v7 = vrot.slane %v31_v5, 2  ;;  %v39_v8 = vadd.f32 %v38_v6, %v37_v4 }
  0x19   :  { %p118_p12 = pnand %p117_p11, %p111_p8 }
  0x1a   :  { %v33_v9 = vadd.f32 %v32_v7, %v31_v5  ;;  %v40_v10 = vrot.slane %v39_v8, 2 }
  0x1c   :  { %v34_v11 = vrot.slane %v33_v9, 1  ;;  %v41_v12 = vadd.f32 %v40_v10, %v39_v8 }
  0x1e   :  { %v35_v13 = vadd.f32 %v34_v11, %v33_v9  ;;  %v42_v14 = vrot.slane %v41_v12, 1 }
  0x20   :  { %v43_v15 = vadd.f32 %v42_v14, %v41_v12  ;;  %v44_v16 = vmul.f32 0.125, %v35_v13 }
  0x22   :  { %v45_v17 = vmul.f32 0.125, %v43_v15  ;;  %v46_v18 = vmul.f32 %v44_v16, %v44_v16 }
  0x24   :  { %v47_v19 = vsub.f32 %v45_v17, %v46_v18 }
  0x26   :  { %v48_v20 = vmax.f32 %v47_v19, 0.0 }
  0x28   :  { %v49_v21 = vadd.f32 1e-05, %v48_v20 }
  0x2a   :  { %86 = vrsqrt.f32 %v49_v21 }
  0x34   :  { %v87_v26 = vpop.eup %86 }
  0x35   :  { %v52_v27 = vmul.f32 %v87_v26, %v51_v24 }
  0x37   :  { %v54_v29 = vmul.f32 %v52_v27, %v44_v16  ;;  %v59_v30 = vrot.slane %v52_v27, %v58_v25 }
  0x39   :  { %v55_v31 = vsub.f32 %v53_v28, %v54_v29  ;;  %v60_v32 = vmul.f32 %v59_v30, %v27_v0 }
  0x3b   :  { %v65_v33 = vrot.slane %v55_v31, %v58_v25 }
  0x3d   :  { %v67_v34 = vadd.f32 %v65_v33, %v60_v32 }
  0x3f   :  { %68 = vst.msk [vmem:[#allocation5] sm:$0xff] %vm28_vm0, %v67_v34 }
  0x40   :  { %121 = shalt.err (!%p118_p12)
}
  0x41   :  { %s122_s30 = scalar_lea.hbm %s194_s3, 128 }
  0x42   :  { %p123_p13 = scmp.ne.s32.totalorder %s194_s3, %s122_s30  ;;  %p126_p0 = scmp.lt.u32.totalorder %s122_s30, %s194_s3 }
  0x44   :  { %p128_p1 = pnand %p126_p0, %p123_p13 }
  0x46   :  { %131 = shalt.err (!%p128_p1)
}
  0x47   :  { %78 = dma.vmem_to_hbm [thread:$0]  %s76_s28, 128, %s194_s3, [#allocation4]  }
  0x48   :  { %134 = dma.done.wait [#allocation4], 128  }
  0x49   :  { %135 = vsyncadd [#allocation4], 4294967168 }
  0x4a   :  { %82 = vsyncpa [#allocation3], 1 }
  0x4b   :  { %83 = vsyncpa [#allocation4], 1 }

</bundles_post_ra>
